<compile_context>
chip_gen: v7x
topology: tpu7x:2x2x1
jax: 0.10.0
libtpu: 0.0.40
codegen_flags: <defaults>
</compile_context>

<pallas_src>
import functools
import math

import jax
import jax.numpy as jnp
from jax.experimental import pallas as pl
from jax.experimental.pallas import tpu as pltpu


def _round_up(x, m):
    return ((x + m - 1) // m) * m


# ----------------------------------------------------------------------------- kernel

def _mlp_kernel(x_ref, w_ref, b_ref, o_ref, *, num_layers, sigmoid_output):
    """Fused MLP forward for one row tile.

    x_ref : (tile, Dp)      bf16 activations (zero padded on rows and lanes)
    w_ref : (L, Dp, Dp)     bf16 stacked zero-padded weights (in, out layout)
    b_ref : (L, 1, Dp)      f32  stacked zero-padded biases
    o_ref : (tile, Dp)      f32  lane-dense output (padded lanes sliced off outside)
    """
    h = x_ref[...]                                            # bf16
    acc = None
    for i in range(num_layers):                               # static unroll
        acc = jnp.dot(h, w_ref[i], preferred_element_type=jnp.float32) + b_ref[i]
        if i < num_layers - 1:
            acc = jnp.maximum(acc, 0.0)                       # ReLU in f32
            h = acc.astype(jnp.bfloat16)                      # bf16 for the next MXU pass
    if sigmoid_output:
        acc = pl.reciprocal(1.0 + jnp.exp(-acc), approx=False)
    o_ref[...] = acc


# ----------------------------------------------------------------------------- wrapper

def mlp_forward(x, weights, biases, *, sigmoid_output=False, row_tile=512):
    """Pallas-fused equivalent of MLP.forward.

    x       : (..., input_dim) float32
    weights : list of (in_i, out_i) float32 arrays
    biases  : list of (out_i,)   float32 arrays
    """
    num_layers = len(weights)
    assert len(biases) == num_layers and num_layers >= 1

    dims = [weights[0].shape[0]] + [w.shape[1] for w in weights]
    in_dim, out_dim = dims[0], dims[-1]
    assert x.shape[-1] == in_dim

    lead = x.shape[:-1]
    rows = math.prod(lead) if lead else 1

    # Lane / sublane padding (one-time, outside the kernel).
    dp = _round_up(max(dims), 128)
    tile = row_tile if rows >= row_tile else _round_up(rows, 8)
    rows_pad = _round_up(rows, tile)

    x2 = x.reshape(rows, in_dim)
    xp = jnp.pad(x2, ((0, rows_pad - rows), (0, dp - in_dim))).astype(jnp.bfloat16)

    w_stack = jnp.stack(
        [jnp.pad(w, ((0, dp - w.shape[0]), (0, dp - w.shape[1]))) for w in weights]
    ).astype(jnp.bfloat16)                                    # (L, Dp, Dp)
    b_stack = jnp.stack(
        [jnp.pad(b, (0, dp - b.shape[0]))[None, :] for b in biases]
    ).astype(jnp.float32)                                     # (L, 1, Dp)

    kernel = functools.partial(_mlp_kernel,
                               num_layers=num_layers,
                               sigmoid_output=sigmoid_output)

    out = pl.pallas_call(
        kernel,
        out_shape=jax.ShapeDtypeStruct((rows_pad, dp), jnp.float32),
        grid=(rows_pad // tile,),
        in_specs=[
            pl.BlockSpec((tile, dp), lambda i: (i, 0)),                    # activations
            pl.BlockSpec((num_layers, dp, dp), lambda i: (0, 0, 0)),       # weights (resident)
            pl.BlockSpec((num_layers, 1, dp), lambda i: (0, 0, 0)),        # biases  (resident)
        ],
        out_specs=pl.BlockSpec((tile, dp), lambda i: (i, 0)),
        compiler_params=pltpu.CompilerParams(
            dimension_semantics=("parallel",),
            vmem_limit_bytes=64 * 1024 * 1024,
        ),
    )(xp, w_stack, b_stack)

    return out[:rows, :out_dim].reshape(*lead, out_dim)


# ----------------------------------------------------------------------------- reference

def mlp_reference(x, weights, biases, sigmoid_output=False):
    h = x
    n = len(weights)
    for i, (w, b) in enumerate(zip(weights, biases)):
        h = h @ w + b
        if i < n - 1:
            h = jnp.maximum(h, 0.0)
    if sigmoid_output:
        h = jax.nn.sigmoid(h)
    return h


def make_mlp_params(key, dims):
    """nn.Linear-style init: U(-1/sqrt(fan_in), 1/sqrt(fan_in))."""
    ws, bs = [], []
    for i in range(len(dims) - 1):
        key, kw, kb = jax.random.split(key, 3)
        bound = 1.0 / math.sqrt(dims[i])
        ws.append(jax.random.uniform(kw, (dims[i], dims[i + 1]), jnp.float32, -bound, bound))
        bs.append(jax.random.uniform(kb, (dims[i + 1],), jnp.float32, -bound, bound))
    return ws, bs, key


# ----------------------------------------------------------------------------- main

if __name__ == "__main__":
    key = jax.random.PRNGKey(0)

    # Case 1: hypernetwork-style MLP(32, 32, 32, num_layers=3), no sigmoid,
    # applied to a (batch, seq, dim) token tensor.
    B, T, D = 2, 8, 32
    ws1, bs1, key = make_mlp_params(key, [D, D, D, D])
    key, kx = jax.random.split(key)
    x1 = jax.random.normal(kx, (B, T, D), jnp.float32)

    y1 = mlp_forward(x1, ws1, bs1, sigmoid_output=False)
    y1_ref = mlp_reference(x1, ws1, bs1, sigmoid_output=False)

    # Case 2: IoU-head-style MLP(32, 32, 4, num_layers=3) with sigmoid output
    # (narrow output dim -> exercises the lane-padded output path).
    iou_hidden, n_masks = 32, 4
    ws2, bs2, key = make_mlp_params(key, [D, iou_hidden, iou_hidden, n_masks])
    key, kx2 = jax.random.split(key)
    x2 = jax.random.normal(kx2, (B, D), jnp.float32)

    y2 = mlp_forward(x2, ws2, bs2, sigmoid_output=True)
    y2_ref = mlp_reference(x2, ws2, bs2, sigmoid_output=True)

    jax.block_until_ready((y1, y2))

    assert y1.shape == (B, T, D), y1.shape
    assert y2.shape == (B, n_masks), y2.shape
    assert bool(jnp.all(jnp.isfinite(y1))) and bool(jnp.all(jnp.isfinite(y2)))
    # bf16 matmul operands with f32 accumulation -> loose tolerance vs f32 reference.
    assert bool(jnp.allclose(y1, y1_ref, atol=5e-2, rtol=5e-2)), \
        float(jnp.max(jnp.abs(y1 - y1_ref)))
    assert bool(jnp.allclose(y2, y2_ref, atol=5e-2, rtol=5e-2)), \
        float(jnp.max(jnp.abs(y2 - y2_ref)))

    print("KERNEL_OK")
</pallas_src>

<mosaic_0001>
module attributes {stable_mosaic.version = 11 : i64} {
  func.func @_mlp_kernel(%arg0: i32, %arg1: memref<16x128xbf16, #tpu.memory_space<vmem>>, %arg2: memref<3x128x128xbf16, #tpu.memory_space<vmem>>, %arg3: memref<3x1x128xf32, #tpu.memory_space<vmem>>, %arg4: memref<16x128xf32, #tpu.memory_space<vmem>>) attributes {dimension_semantics = [#tpu.dimension_semantics<parallel>], iteration_bounds = array<i64: 1>, scalar_prefetch = 0 : i64, scratch_operands = 0 : i64, tpu.core_type = #tpu.core_type<tc>, window_params = [{transform_indices = @transform_0, window_bounds = array<i64: 16, 128>}, {pipeline_mode = #tpu.pipeline_mode<synchronous>, transform_indices = @transform_1, window_bounds = array<i64: 3, 128, 128>}, {pipeline_mode = #tpu.pipeline_mode<synchronous>, transform_indices = @transform_2, window_bounds = array<i64: 3, 1, 128>}, {transform_indices = @transform_3, window_bounds = array<i64: 16, 128>}]} {
    %c0 = arith.constant 0 : index
    %c0_0 = arith.constant 0 : index
    %0 = vector.load %arg1[%c0, %c0_0] : memref<16x128xbf16, #tpu.memory_space<vmem>>, vector<16x128xbf16>
    %c0_1 = arith.constant 0 : index
    %c0_2 = arith.constant 0 : index
    %c0_3 = arith.constant 0 : index
    %1 = vector.load %arg2[%c0_1, %c0_2, %c0_3] : memref<3x128x128xbf16, #tpu.memory_space<vmem>>, vector<1x128x128xbf16>
    %2 = vector.shape_cast %1 : vector<1x128x128xbf16> to vector<128x128xbf16>
    %cst = arith.constant dense<0.000000e+00> : vector<16x128xf32>
    %3 = tpu.matmul %0, %2, %cst {dimension_numbers = #tpu.dot_dimension_numbers<[1], [0], [0], [1], [0, 0, 1, 1], [], []>} : vector<16x128xbf16>, vector<128x128xbf16>, vector<16x128xf32> -> vector<16x128xf32>
    %c0_4 = arith.constant 0 : index
    %c0_5 = arith.constant 0 : index
    %c0_6 = arith.constant 0 : index
    %4 = vector.load %arg3[%c0_4, %c0_5, %c0_6] : memref<3x1x128xf32, #tpu.memory_space<vmem>>, vector<1x1x128xf32>
    %5 = vector.shape_cast %4 : vector<1x1x128xf32> to vector<1x128xf32>
    %6 = vector.broadcast %5 : vector<1x128xf32> to vector<16x128xf32>
    %7 = arith.addf %3, %6 : vector<16x128xf32>
    %cst_7 = arith.constant 0.000000e+00 : f32
    %8 = vector.broadcast %cst_7 : f32 to vector<16x128xf32>
    %9 = arith.maximumf %7, %8 : vector<16x128xf32>
    %10 = arith.truncf %9 : vector<16x128xf32> to vector<16x128xbf16>
    %c1 = arith.constant 1 : index
    %c0_8 = arith.constant 0 : index
    %c0_9 = arith.constant 0 : index
    %11 = vector.load %arg2[%c1, %c0_8, %c0_9] : memref<3x128x128xbf16, #tpu.memory_space<vmem>>, vector<1x128x128xbf16>
    %12 = vector.shape_cast %11 : vector<1x128x128xbf16> to vector<128x128xbf16>
    %cst_10 = arith.constant dense<0.000000e+00> : vector<16x128xf32>
    %13 = tpu.matmul %10, %12, %cst_10 {dimension_numbers = #tpu.dot_dimension_numbers<[1], [0], [0], [1], [0, 0, 1, 1], [], []>} : vector<16x128xbf16>, vector<128x128xbf16>, vector<16x128xf32> -> vector<16x128xf32>
    %c1_11 = arith.constant 1 : index
    %c0_12 = arith.constant 0 : index
    %c0_13 = arith.constant 0 : index
    %14 = vector.load %arg3[%c1_11, %c0_12, %c0_13] : memref<3x1x128xf32, #tpu.memory_space<vmem>>, vector<1x1x128xf32>
    %15 = vector.shape_cast %14 : vector<1x1x128xf32> to vector<1x128xf32>
    %16 = vector.broadcast %15 : vector<1x128xf32> to vector<16x128xf32>
    %17 = arith.addf %13, %16 : vector<16x128xf32>
    %cst_14 = arith.constant 0.000000e+00 : f32
    %18 = vector.broadcast %cst_14 : f32 to vector<16x128xf32>
    %19 = arith.maximumf %17, %18 : vector<16x128xf32>
    %20 = arith.truncf %19 : vector<16x128xf32> to vector<16x128xbf16>
    %c2 = arith.constant 2 : index
    %c0_15 = arith.constant 0 : index
    %c0_16 = arith.constant 0 : index
    %21 = vector.load %arg2[%c2, %c0_15, %c0_16] : memref<3x128x128xbf16, #tpu.memory_space<vmem>>, vector<1x128x128xbf16>
    %22 = vector.shape_cast %21 : vector<1x128x128xbf16> to vector<128x128xbf16>
    %cst_17 = arith.constant dense<0.000000e+00> : vector<16x128xf32>
    %23 = tpu.matmul %20, %22, %cst_17 {dimension_numbers = #tpu.dot_dimension_numbers<[1], [0], [0], [1], [0, 0, 1, 1], [], []>} : vector<16x128xbf16>, vector<128x128xbf16>, vector<16x128xf32> -> vector<16x128xf32>
    %c2_18 = arith.constant 2 : index
    %c0_19 = arith.constant 0 : index
    %c0_20 = arith.constant 0 : index
    %24 = vector.load %arg3[%c2_18, %c0_19, %c0_20] : memref<3x1x128xf32, #tpu.memory_space<vmem>>, vector<1x1x128xf32>
    %25 = vector.shape_cast %24 : vector<1x1x128xf32> to vector<1x128xf32>
    %26 = vector.broadcast %25 : vector<1x128xf32> to vector<16x128xf32>
    %27 = arith.addf %23, %26 : vector<16x128xf32>
    %c0_21 = arith.constant 0 : index
    %c0_22 = arith.constant 0 : index
    %28 = vector.load %arg4[%c0_21, %c0_22] : memref<16x128xf32, #tpu.memory_space<vmem>>, vector<16x128xf32>
    tpu.vector_store %arg4[%c0_21, %c0_22], %27 {strides = array<i32>} : memref<16x128xf32, #tpu.memory_space<vmem>>, vector<16x128xf32>,
    return
  }
  func.func @transform_0(%arg0: i32) -> (i32, i32) {
    %c0_i32 = arith.constant 0 : i32
    %c0_i32_0 = arith.constant 0 : i32
    return %arg0, %c0_i32 : i32, i32
  }
  func.func @transform_1(%arg0: i32) -> (i32, i32, i32) {
    %c0_i32 = arith.constant 0 : i32
    %c0_i32_0 = arith.constant 0 : i32
    %c0_i32_1 = arith.constant 0 : i32
    %c0_i32_2 = arith.constant 0 : i32
    return %c0_i32, %c0_i32_0, %c0_i32_1 : i32, i32, i32
  }
  func.func @transform_2(%arg0: i32) -> (i32, i32, i32) {
    %c0_i32 = arith.constant 0 : i32
    %c0_i32_0 = arith.constant 0 : i32
    %c0_i32_1 = arith.constant 0 : i32
    %c0_i32_2 = arith.constant 0 : i32
    return %c0_i32, %c0_i32_0, %c0_i32_1 : i32, i32, i32
  }
  func.func @transform_3(%arg0: i32) -> (i32, i32) {
    %c0_i32 = arith.constant 0 : i32
    %c0_i32_0 = arith.constant 0 : i32
    return %arg0, %c0_i32 : i32, i32
  }
}

</mosaic_0001>

<bundles_post_ra>
// kernel: tpu_custom_call.1
= control target key start
LH: loop header
LB: loop body
LE: loop exit
PB: predicated region body
PF: predicated region fallthrough
CT: control target
= control target key end

     0   :  { %8 = vsyncpa [#allocation3], 0  ;;  %s794_s0 = inlined_call_operand.hbm [shape: bf16[16,128], index: 0, kind: input, shape index: {}]   ;;  %s795_s1 = inlined_call_operand.hbm [shape: bf16[3,128,128], index: 1, kind: input, shape index: {}]   ;;  %s796_s2 = inlined_call_operand.hbm [shape: f32[3,1,128], index: 2, kind: input, shape index: {}]   ;;  %s797_s3 = inlined_call_operand.hbm [shape: f32[16,128], index: 3, kind: output, shape index: {}]  }
   0x1   :  { %9 = vsyncpa [#allocation6], 0 }
   0x2   :  { %10 = vsyncpa [#allocation4], 0  ;;  %s677_s12 = smov [#allocation5]   ;;  %s678_s14 = smov [#allocation2]  }
   0x3   :  { %s28_s13 = sshll.u32 %s677_s12, 4  ;;  %s16_s15 = sshll.u32 %s678_s14, 4  ;;  %s29_s13 = int_to_ptr.vmem [resolvable:$true] %s28_s13  ;;  %s709_s15 = int_to_ptr.vmem [resolvable:$true] %s16_s15 }
   0x4   :  { %s583_s18 = scalar_lea.hbm %s795_s1, 3072 }
   0x5   :  { %p584_p0 = scmp.ne.s32.totalorder %s795_s1, %s583_s18  ;;  %p587_p1 = scmp.lt.u32.totalorder %s583_s18, %s795_s1 }
   0x7   :  { %p589_p2 = pnand %p587_p1, %p584_p0 }
   0x9   :  { %592 = shalt.err (!%p589_p2)
}
   0xa   :  { %s593_s23 = scalar_lea.vmem %s29_s13, 3072  ;;  %p598_p4 = scmp.lt.s32.totalorder %s29_s13, %s29_s13 }
   0xb   :  { %p594_p3 = scmp.ne.s32.totalorder %s29_s13, %s593_s23  ;;  %p599_p5 = scmp.lt.s32.totalorder %s593_s23, %s593_s23 }
   0xd   :  { %p600_p6 = por %p599_p5, %p598_p4 }
   0xf   :  { %p601_p7 = pnand %p600_p6, %p594_p3 }
  0x11   :  { %604 = shalt.err (!%p601_p7)
}
  0x12   :  { %s679_s24 = smov 64   ;;  %s680_s25 = smov 4  }
  0x13   :  { %34 = dma.hbm_to_vmem [thread:$0]  %s795_s1, 3072, %s29_s13, [#allocation6], %s679_s24, %s679_s24, %s680_s25  }
  0x14   :  { %s605_s30 = scalar_lea.hbm %s794_s0, 128 }
  0x15   :  { %p606_p8 = scmp.ne.s32.totalorder %s794_s0, %s605_s30  ;;  %p609_p9 = scmp.lt.u32.totalorder %s605_s30, %s794_s0 }
  0x17   :  { %p611_p10 = pnand %p609_p9, %p606_p8 }
  0x19   :  { %614 = shalt.err (!%p611_p10)
}
  0x1a   :  { %s615_s8 = scalar_lea.vmem %s709_s15, 128  ;;  %p620_p12 = scmp.lt.s32.totalorder %s709_s15, %s709_s15 }
  0x1b   :  { %p616_p11 = scmp.ne.s32.totalorder %s709_s15, %s615_s8  ;;  %p621_p13 = scmp.lt.s32.totalorder %s615_s8, %s615_s8 }
  0x1d   :  { %p622_p0 = por %p621_p13, %p620_p12 }
  0x1f   :  { %p623_p1 = pnand %p622_p0, %p616_p11 }
  0x21   :  { %626 = shalt.err (!%p623_p1)
}
  0x22   :  { %22 = dma.hbm_to_vmem [thread:$0]  %s794_s0, 128, %s709_s15, [#allocation3], %s679_s24, %s679_s24, %s680_s25  }
  0x23   :  { %s681_s10 = smov [#allocation7]   ;;  %s627_s14 = scalar_lea.hbm %s796_s2, 48 }
  0x24   :  { %s40_s11 = sshll.u32 %s681_s10, 4  ;;  %p628_p2 = scmp.ne.s32.totalorder %s796_s2, %s627_s14  ;;  %s41_s11 = int_to_ptr.vmem [resolvable:$true] %s40_s11 }
  0x25   :  { %p631_p3 = scmp.lt.u32.totalorder %s627_s14, %s796_s2 }
  0x27   :  { %p633_p4 = pnand %p631_p3, %p628_p2 }
  0x29   :  { %636 = shalt.err (!%p633_p4)
}
  0x2a   :  { %s637_s20 = scalar_lea.vmem %s41_s11, 48  ;;  %s641_s0 = scalar_lea.vmem %s41_s11, 64 }
  0x2b   :  { %p638_p5 = scmp.ne.s32.totalorder %s41_s11, %s637_s20  ;;  %p642_p6 = scmp.lt.s32.totalorder %s41_s11, %s41_s11 }
  0x2c   :  { %p643_p7 = scmp.lt.s32.totalorder %s641_s0, %s637_s20 }
  0x2e   :  { %p644_p8 = por %p643_p7, %p642_p6 }
  0x30   :  { %p645_p9 = pnand %p644_p8, %p638_p5 }
  0x32   :  { %648 = shalt.err (!%p645_p9)
}
  0x33   :  { %s682_s15 = smov 16   ;;  %s683_s21 = smov 1  }
  0x34   :  { %46 = dma.hbm_to_vmem [thread:$0]  %s796_s2, 48, %s41_s11, [#allocation6], %s682_s15, %s682_s15, %s683_s21  }
  0x35   :  { %671 = dma.done.wait [#allocation3], 128  }
  0x36   :  { %672 = vsyncadd [#allocation3], 4294967168 }
  0x37   :  { %673 = dma.done.wait [#allocation6], 3120  }
  0x38   :  { %674 = vsyncadd [#allocation6], 4294964176  ;;  %v684_v0 = vmov 0.0   ;;  %vm685_vm0 = vmmov 0   ;;  %v558_v1 = vld [vmem:[#allocation5] sm:$0xff]   ;;  %v559_v2 = vld [vmem:[#allocation5 + $0x8] sm:$0xff]  }
  0x39   :  { %486 = vmatprep.subr.bf16.mxu0 %v684_v0  ;;  %502 = vmatprep.mubr.msk.bf16.mxu0 %vm685_vm0, %v684_v0  ;;  %v560_v3 = vld [vmem:[#allocation5 + $0x10] sm:$0xff]   ;;  %v567_v4 = vld [vmem:[#allocation5 + $0x40] sm:$0xff]   ;;  %v561_v5 = vld [vmem:[#allocation5 + $0x18] sm:$0xff]   ;;  %s686_s2 = smov [#allocation8]  }
  0x3a   :  { %506 = vmatprep.subr.bf16.mxu1 %v684_v0  ;;  %522 = vmatprep.mubr.msk.bf16.mxu1 %vm685_vm0, %v684_v0  ;;  %v568_v6 = vld [vmem:[#allocation5 + $0x48] sm:$0xff]   ;;  %v562_v7 = vld [vmem:[#allocation5 + $0x20] sm:$0xff]   ;;  %v569_v8 = vld [vmem:[#allocation5 + $0x50] sm:$0xff]   ;;  %s418_s24 = sshll.u32 %s686_s2, 4  ;;  %s419_s24 = int_to_ptr.vmem [resolvable:$true] %s418_s24 }
  0x3b   :  { %487 = vmatpush3.bf16.msra.mxu0 %v558_v1  ;;  %507 = vmatpush3.bf16.msra.mxu1 %v567_v4  ;;  %v563_v9 = vld [vmem:[#allocation5 + $0x28] sm:$0xff]   ;;  %v570_v10 = vld [vmem:[#allocation5 + $0x58] sm:$0xff]   ;;  %v564_v11 = vld [vmem:[#allocation5 + $0x30] sm:$0xff]   ;;  %s649_s25 = scalar_lea.vmem %s419_s24, 256  ;;  %p654_p11 = scmp.lt.s32.totalorder %s419_s24, %s419_s24 }
  0x3c   :  { %488 = vmatprep.subr.bf16.mxu0 %v684_v0  ;;  %508 = vmatprep.subr.bf16.mxu1 %v684_v0  ;;  %v571_v12 = vld [vmem:[#allocation5 + $0x60] sm:$0xff]   ;;  %v565_v13 = vld [vmem:[#allocation5 + $0x38] sm:$0xff]   ;;  %v572_v14 = vld [vmem:[#allocation5 + $0x68] sm:$0xff]   ;;  %p650_p10 = scmp.ne.s32.totalorder %s419_s24, %s649_s25  ;;  %p655_p12 = scmp.lt.s32.totalorder %s649_s25, %s649_s25 }
  0x3d   :  { %v566_v15 = vld [vmem:[#allocation2] sm:$0xff]   ;;  %v573_v16 = vld [vmem:[#allocation5 + $0x70] sm:$0xff]   ;;  %v575_v18 = vld [vmem:[#allocation5 + $0x80] sm:$0xff]  }
  0x3e   :  { %v574_v17 = vld [vmem:[#allocation5 + $0x78] sm:$0xff]   ;;  %v576_v19 = vld [vmem:[#allocation5 + $0x88] sm:$0xff]   ;;  %v577_v20 = vld [vmem:[#allocation5 + $0x90] sm:$0xff]   ;;  %p656_p13 = por %p655_p12, %p654_p11 }
  0x3f   :  { %489 = vmatpush3.bf16.msra.mxu0 %v559_v2  ;;  %509 = vmatpush3.bf16.msra.mxu1 %v568_v6  ;;  %v578_v21 = vld [vmem:[#allocation5 + $0x98] sm:$0xff]   ;;  %v579_v22 = vld [vmem:[#allocation5 + $0xa0] sm:$0xff]   ;;  %v580_v23 = vld [vmem:[#allocation5 + $0xa8] sm:$0xff]  }
  0x40   :  { %490 = vmatprep.subr.bf16.mxu0 %v684_v0  ;;  %510 = vmatprep.subr.bf16.mxu1 %v684_v0  ;;  %v431_v24 = vld [vmem:[#allocation7] ss:$0 sm:$0xff]  ;;  %v581_v34 = vld [vmem:[#allocation5 + $0xb0] sm:$0xff]   ;;  %v582_v35 = vld [vmem:[#allocation5 + $0xb8] sm:$0xff]   ;;  %p657_p0 = pnand %p656_p13, %p650_p10 }
  0x41   :  { %v441_v36 = vld [vmem:[#allocation7 + $0x1] ss:$0 sm:$0xff]  ;;  %v450_v46 = vld [vmem:[#allocation7 + $0x2] ss:$0 sm:$0xff] }
  0x43   :  { %491 = vmatpush3.bf16.msra.mxu0 %v560_v3  ;;  %511 = vmatpush3.bf16.msra.mxu1 %v569_v8 }
  0x44   :  { %492 = vmatprep.subr.bf16.mxu0 %v684_v0  ;;  %512 = vmatprep.subr.bf16.mxu1 %v684_v0 }
  0x47   :  { %493 = vmatpush3.bf16.msra.mxu0 %v561_v5  ;;  %513 = vmatpush3.bf16.msra.mxu1 %v570_v10 }
  0x48   :  { %494 = vmatprep.subr.bf16.mxu0 %v684_v0  ;;  %514 = vmatprep.subr.bf16.mxu1 %v684_v0 }
  0x4b   :  { %495 = vmatpush3.bf16.msra.mxu0 %v562_v7  ;;  %515 = vmatpush3.bf16.msra.mxu1 %v571_v12 }
  0x4c   :  { %496 = vmatprep.subr.bf16.mxu0 %v684_v0  ;;  %516 = vmatprep.subr.bf16.mxu1 %v684_v0 }
  0x4f   :  { %497 = vmatpush3.bf16.msra.mxu0 %v563_v9  ;;  %517 = vmatpush3.bf16.msra.mxu1 %v572_v14 }
  0x50   :  { %498 = vmatprep.subr.bf16.mxu0 %v684_v0  ;;  %518 = vmatprep.subr.bf16.mxu1 %v684_v0 }
  0x53   :  { %499 = vmatpush3.bf16.msra.mxu0 %v564_v11  ;;  %519 = vmatpush3.bf16.msra.mxu1 %v573_v16 }
  0x54   :  { %500 = vmatprep.subr.bf16.mxu0 %v684_v0  ;;  %520 = vmatprep.subr.bf16.mxu1 %v684_v0 }
  0x57   :  { %501 = vmatpush3.bf16.msra.mxu0 %v565_v13  ;;  %521 = vmatpush3.bf16.msra.mxu1 %v574_v17 }
  0x58   :  { %526 = vmatprep.subr.bf16.mxu0 %v684_v0 }
  0x5a   :  { %503 = vmatmul.mubr.bf16.vlgmr.msra.gmra.mrb[0].mxu0 %v566_v15 }
  0x5b   :  { %542 = vmatprep.mubr.msk.bf16.mxu0 %vm685_vm0, %v684_v0  ;;  %527 = vmatpush3.bf16.msra.mxu0 %v575_v18 }
  0x5c   :  { %528 = vmatprep.subr.bf16.mxu0 %v684_v0 }
  0x5f   :  { %529 = vmatpush3.bf16.msra.mxu0 %v576_v19 }
  0x60   :  { %530 = vmatprep.subr.bf16.mxu0 %v684_v0 }
  0x63   :  { %531 = vmatpush3.bf16.msra.mxu0 %v577_v20 }
  0x64   :  { %532 = vmatprep.subr.bf16.mxu0 %v684_v0 }
  0x67   :  { %533 = vmatpush3.bf16.msra.mxu0 %v578_v21 }
  0x68   :  { %534 = vmatprep.subr.bf16.mxu0 %v684_v0 }
  0x6b   :  { %535 = vmatpush3.bf16.msra.mxu0 %v579_v22 }
  0x6c   :  { %536 = vmatprep.subr.bf16.mxu0 %v684_v0 }
  0x6f   :  { %537 = vmatpush3.bf16.msra.mxu0 %v580_v23 }
  0x70   :  { %538 = vmatprep.subr.bf16.mxu0 %v684_v0 }
  0x73   :  { %539 = vmatpush3.bf16.msra.mxu0 %v581_v34 }
  0x74   :  { %540 = vmatprep.subr.bf16.mxu0 %v684_v0 }
  0x77   :  { %541 = vmatpush3.bf16.msra.mxu0 %v582_v35 }
 0x12d   :  { %v170_v25 = vpop.f32.mrb[0].mxu0 }
 0x12e   :  { %v171_v26 = vadd.f32 %v431_v24, %v170_v25  ;;  %v504_v27 = vpop.f32.mrb[1].mxu0 }
 0x12f   :  { %v173_v28 = vpop.f32.mrb[2].mxu0 }
 0x130   :  { %v174_v29 = vadd.f32 %v431_v24, %v173_v28  ;;  %v505_v30 = vpop.f32.mrb[3].mxu0  ;;  %v177_v31 = vmax.f32 %v171_v26, 0.0 }
 0x132   :  { %v178_v32 = vmax.f32 %v174_v29, 0.0 }
 0x134   :  { %v179_v33 = vpack.c.bf16 %v178_v32, %v177_v31 }
 0x136   :  { %523 = vmatmul.mubr.bf16.vlgmr.msra.gmra.mrb[0].mxu1 %v179_v33 }
 0x209   :  { %v287_v37 = vpop.f32.mrb[0].mxu1 }
 0x20a   :  { %v288_v38 = vadd.f32 %v441_v36, %v287_v37  ;;  %v524_v39 = vpop.f32.mrb[1].mxu1 }
 0x20b   :  { %v290_v40 = vpop.f32.mrb[2].mxu1 }
 0x20c   :  { %v291_v41 = vadd.f32 %v441_v36, %v290_v40  ;;  %v525_v42 = vpop.f32.mrb[3].mxu1  ;;  %v294_v43 = vmax.f32 %v288_v38, 0.0 }
 0x20e   :  { %v295_v44 = vmax.f32 %v291_v41, 0.0 }
 0x210   :  { %v296_v45 = vpack.c.bf16 %v295_v44, %v294_v43 }
 0x212   :  { %543 = vmatmul.mubr.bf16.vlgmr.msra.gmra.mrb[4].mxu0 %v296_v45 }
 0x2e5   :  { %v404_v47 = vpop.f32.mrb[4].mxu0 }
 0x2e6   :  { %v405_v48 = vadd.f32 %v450_v46, %v404_v47  ;;  %v544_v49 = vpop.f32.mrb[5].mxu0 }
 0x2e7   :  { %v407_v50 = vpop.f32.mrb[6].mxu0 }
 0x2e8   :  { %411 = vst [vmem:[#allocation8] sm:$0xff] %v405_v48  ;;  %v408_v51 = vadd.f32 %v450_v46, %v407_v50  ;;  %v545_v52 = vpop.f32.mrb[7].mxu0 }
 0x2ea   :  { %412 = vst [vmem:[#allocation8 + $0x8] sm:$0xff] %v408_v51 }
 0x2eb   :  { %660 = shalt.err (!%p657_p0)
}
 0x2ec   :  { %s661_s28 = scalar_lea.hbm %s797_s3, 256 }
 0x2ed   :  { %p662_p1 = scmp.ne.s32.totalorder %s797_s3, %s661_s28  ;;  %p665_p2 = scmp.lt.u32.totalorder %s661_s28, %s797_s3 }
 0x2ef   :  { %p667_p3 = pnand %p665_p2, %p662_p1 }
 0x2f1   :  { %670 = shalt.err (!%p667_p3)
}
 0x2f2   :  { %s687_s6 = smov 128   ;;  %s688_s7 = smov 8  }
 0x2f3   :  { %424 = dma.vmem_to_hbm [thread:$0]  %s419_s24, 256, %s797_s3, [#allocation4], %s687_s6, %s687_s6, %s688_s7  }
 0x2f4   :  { %675 = dma.done.wait [#allocation4], 256  }
 0x2f5   :  { %676 = vsyncadd [#allocation4], 4294967040 }
 0x2f6   :  { %428 = vsyncpa [#allocation3], 1 }
 0x2f7   :  { %429 = vsyncpa [#allocation6], 1 }
 0x2f8   :  { %430 = vsyncpa [#allocation4], 1 }

</bundles_post_ra>
